<compile_context>
chip_gen: v7x
topology: tpu7x:2x2x1
jax: 0.10.0
libtpu: 0.0.40
codegen_flags: <defaults>
</compile_context>

<pallas_src>
import jax
import jax.numpy as jnp
from jax.experimental import pallas as pl
from jax.experimental.pallas import tpu as pltpu


def _round_up(x, m):
    return ((x + m - 1) // m) * m


def _autoencoder_kernel(x_ref,
                        w0_ref, b0_ref,
                        w1_ref, b1_ref,
                        w2_ref, b2_ref,
                        w3_ref, b3_ref,
                        o_ref):
    """Fused 4-layer MLP autoencoder on a lane-dense folded batch tile.

    x_ref:  (tile_rows, fold*F)  bf16 batch tile (fold rows packed per lane row)
    wK_ref: (fold*inK, fold*outK) bf16 block-diagonal folded weights (resident)
    bK_ref: (1, fold*outK)        f32 folded bias row
    o_ref:  (tile_rows, fold*F)   reconstruction, original dtype
    """
    x = x_ref[...]  # already bf16; no redundant cast

    def layer(h, w_ref, b_ref):
        acc = jnp.dot(h, w_ref[...], preferred_element_type=jnp.float32)
        acc = acc + b_ref[...]            # bias in f32
        acc = jnp.maximum(acc, 0.0)       # ReLU in f32
        return acc.astype(jnp.bfloat16)   # bf16 back into the MXU

    h = layer(x, w0_ref, b0_ref)   # encoder
    h = layer(h, w1_ref, b1_ref)
    h = layer(h, w2_ref, b2_ref)   # decoder hidden
    # final Linear, no activation
    out = jnp.dot(h, w3_ref[...], preferred_element_type=jnp.float32) + b3_ref[...]
    o_ref[...] = out.astype(o_ref.dtype)


def _fold_params(params, fold, compute_dtype):
    """Build block-diagonal folded weights (cast once to compute_dtype) + f32 biases."""
    eye = jnp.eye(fold, dtype=jnp.float32)
    folded = []
    for (w, b) in params:
        wf = jnp.kron(eye, w.astype(jnp.float32)).astype(compute_dtype)
        bf = jnp.tile(b.astype(jnp.float32), fold).reshape(1, -1)
        folded.append((wf, bf))
    return folded


def autoencoder_forward(x, params, *, tile_rows=256, compute_dtype=jnp.bfloat16):
    """params = [(W0,b0), ..., (W3,b3)] with W stored (in_features, out_features)."""
    B, F = x.shape

    # Pack `fold` batch rows per 128-lane row (free reshape) when F divides 128.
    fold = 128 // F if (F <= 128 and 128 % F == 0) else 1
    lane_w = fold * F

    folded = _fold_params(params, fold, compute_dtype)

    rows = pl.cdiv(B, fold)                                   # folded row count
    tr = max(8, min(tile_rows, _round_up(rows, 8)))           # tile rows (sublane mult.)
    tr = _round_up(tr, 8)
    rows_p = _round_up(rows, tr)                              # padded folded rows
    b_pad = rows_p * fold                                     # padded batch

    xp = x if b_pad == B else jnp.pad(x, ((0, b_pad - B), (0, 0)))
    xf = xp.reshape(rows_p, lane_w).astype(compute_dtype)     # lane-dense bf16 slab

    flat = []
    in_specs = [pl.BlockSpec((tr, lane_w), lambda i: (i, 0))]  # batch-tiled input
    for (w, b) in folded:
        flat.append(w)
        flat.append(b)
        # full-array blocks with constant index map -> stay resident in VMEM
        in_specs.append(pl.BlockSpec(w.shape, lambda i: (0, 0)))
        in_specs.append(pl.BlockSpec(b.shape, lambda i: (0, 0)))

    out_spec = pl.BlockSpec((tr, lane_w), lambda i: (i, 0))

    flops = 2 * rows_p * sum(w.shape[0] * w.shape[1] for (w, _) in folded)
    bytes_accessed = (
        xf.size * xf.dtype.itemsize                      # input slab (bf16)
        + rows_p * lane_w * x.dtype.itemsize             # output slab
        + sum(w.size * w.dtype.itemsize + b.size * b.dtype.itemsize
              for (w, b) in folded)                      # resident params
    )

    out_folded = pl.pallas_call(
        _autoencoder_kernel,
        out_shape=jax.ShapeDtypeStruct((rows_p, lane_w), x.dtype),
        grid_spec=pltpu.PrefetchScalarGridSpec(
            num_scalar_prefetch=0,
            grid=(rows_p // tr,),
            in_specs=in_specs,
            out_specs=out_spec,
        ),
        compiler_params=pltpu.CompilerParams(
            # batch-tile axis is independent -> shard across TCs on megacore parts.
            # NOTE: for very aggressive tile_rows on v7x (64 MiB VMEM), also set
            # vmem_limit_bytes; with the default tile (~0.5 MiB/tile) it's unneeded.
            dimension_semantics=("parallel",),
        ),
        cost_estimate=pl.CostEstimate(
            flops=flops, transcendentals=0, bytes_accessed=bytes_accessed),
    )(xf, *flat)

    out = out_folded.reshape(b_pad, F)
    if b_pad != B:
        out = out[:B]
    return out


def init_params(key, in_features, hidden_layers_dims):
    """Deterministic init mirroring the PyTorch module's layer structure."""
    dims = [(in_features, hidden_layers_dims[0])]
    for i in range(0, len(hidden_layers_dims) // 2):                       # encoder
        dims.append((hidden_layers_dims[i], hidden_layers_dims[i + 1]))
    for i in range(len(hidden_layers_dims) // 2, len(hidden_layers_dims) - 1):  # decoder
        dims.append((hidden_layers_dims[i], hidden_layers_dims[i + 1]))
    dims.append((hidden_layers_dims[-1], in_features))

    params = []
    for (fin, fout) in dims:
        key, kw, kb = jax.random.split(key, 3)
        bound = 1.0 / jnp.sqrt(fin)  # PyTorch nn.Linear default init range
        w = jax.random.uniform(kw, (fin, fout), jnp.float32, -bound, bound)
        b = jax.random.uniform(kb, (fout,), jnp.float32, -bound, bound)
        params.append((w, b))
    return params


def reference_forward(x, params, compute_dtype=None):
    """Plain-JAX reference. compute_dtype=bf16 mirrors the kernel's mixed precision."""
    h = x.astype(jnp.float32)
    n = len(params)
    for i, (w, b) in enumerate(params):
        if compute_dtype is not None:
            h = jnp.dot(h.astype(compute_dtype), w.astype(compute_dtype),
                        preferred_element_type=jnp.float32) + b
        else:
            h = h @ w + b
        if i != n - 1:
            h = jnp.maximum(h, 0.0)
    return h


if __name__ == "__main__":
    in_features = 32
    hidden_layers_dims = [16, 8, 16]

    key = jax.random.PRNGKey(0)
    key, kp = jax.random.split(key)
    params = init_params(kp, in_features, hidden_layers_dims)

    # batch=16 (tiny, even fold) and batch=200 (non-divisible -> padded tail tile)
    for batch in (16, 200):
        key, kx = jax.random.split(key)
        x = jax.random.normal(kx, (batch, in_features), jnp.float32)

        out = jax.block_until_ready(autoencoder_forward(x, params))
        assert out.shape == (batch, in_features)

        # Tight check vs. a reference that uses the same bf16/f32 mixed precision.
        ref_bf16 = reference_forward(x, params, compute_dtype=jnp.bfloat16)
        assert jnp.allclose(out, ref_bf16, atol=1e-2, rtol=1e-2), (
            float(jnp.max(jnp.abs(out - ref_bf16))))

        # Loose check vs. full-f32 reference (bf16 MXU inputs -> relaxed tolerance).
        ref_f32 = reference_forward(x, params)
        assert jnp.allclose(out, ref_f32, atol=7e-2, rtol=7e-2), (
            float(jnp.max(jnp.abs(out - ref_f32))))

    print("KERNEL_OK")
</pallas_src>

<mosaic_0001>
module attributes {stable_mosaic.version = 11 : i64} {
  func.func @_autoencoder_kernel(%arg0: i32, %arg1: memref<8x128xbf16, #tpu.memory_space<vmem>>, %arg2: memref<128x64xbf16, #tpu.memory_space<vmem>>, %arg3: memref<1x64xf32, #tpu.memory_space<vmem>>, %arg4: memref<64x32xbf16, #tpu.memory_space<vmem>>, %arg5: memref<1x32xf32, #tpu.memory_space<vmem>>, %arg6: memref<32x64xbf16, #tpu.memory_space<vmem>>, %arg7: memref<1x64xf32, #tpu.memory_space<vmem>>, %arg8: memref<64x128xbf16, #tpu.memory_space<vmem>>, %arg9: memref<1x128xf32, #tpu.memory_space<vmem>>, %arg10: memref<8x128xf32, #tpu.memory_space<vmem>>) attributes {dimension_semantics = [#tpu.dimension_semantics<parallel>], iteration_bounds = array<i64: 1>, scalar_prefetch = 0 : i64, scratch_operands = 0 : i64, tpu.core_type = #tpu.core_type<tc>, window_params = [{transform_indices = @transform_0, window_bounds = array<i64: 8, 128>}, {pipeline_mode = #tpu.pipeline_mode<synchronous>, transform_indices = @transform_1, window_bounds = array<i64: 128, 64>}, {pipeline_mode = #tpu.pipeline_mode<synchronous>, transform_indices = @transform_2, window_bounds = array<i64: 1, 64>}, {pipeline_mode = #tpu.pipeline_mode<synchronous>, transform_indices = @transform_3, window_bounds = array<i64: 64, 32>}, {pipeline_mode = #tpu.pipeline_mode<synchronous>, transform_indices = @transform_4, window_bounds = array<i64: 1, 32>}, {pipeline_mode = #tpu.pipeline_mode<synchronous>, transform_indices = @transform_5, window_bounds = array<i64: 32, 64>}, {pipeline_mode = #tpu.pipeline_mode<synchronous>, transform_indices = @transform_6, window_bounds = array<i64: 1, 64>}, {pipeline_mode = #tpu.pipeline_mode<synchronous>, transform_indices = @transform_7, window_bounds = array<i64: 64, 128>}, {pipeline_mode = #tpu.pipeline_mode<synchronous>, transform_indices = @transform_8, window_bounds = array<i64: 1, 128>}, {transform_indices = @transform_9, window_bounds = array<i64: 8, 128>}]} {
    %c0 = arith.constant 0 : index
    %c0_0 = arith.constant 0 : index
    %0 = vector.load %arg1[%c0, %c0_0] : memref<8x128xbf16, #tpu.memory_space<vmem>>, vector<8x128xbf16>
    %c0_1 = arith.constant 0 : index
    %c0_2 = arith.constant 0 : index
    %1 = vector.load %arg2[%c0_1, %c0_2] : memref<128x64xbf16, #tpu.memory_space<vmem>>, vector<128x64xbf16>
    %cst = arith.constant dense<0.000000e+00> : vector<8x64xf32>
    %2 = tpu.matmul %0, %1, %cst {dimension_numbers = #tpu.dot_dimension_numbers<[1], [0], [0], [1], [0, 0, 1, 1], [], []>} : vector<8x128xbf16>, vector<128x64xbf16>, vector<8x64xf32> -> vector<8x64xf32>
    %c0_3 = arith.constant 0 : index
    %c0_4 = arith.constant 0 : index
    %3 = vector.load %arg3[%c0_3, %c0_4] : memref<1x64xf32, #tpu.memory_space<vmem>>, vector<1x64xf32>
    %4 = vector.broadcast %3 : vector<1x64xf32> to vector<8x64xf32>
    %5 = arith.addf %2, %4 : vector<8x64xf32>
    %cst_5 = arith.constant 0.000000e+00 : f32
    %6 = vector.broadcast %cst_5 : f32 to vector<8x64xf32>
    %7 = arith.maximumf %5, %6 : vector<8x64xf32>
    %8 = arith.truncf %7 : vector<8x64xf32> to vector<8x64xbf16>
    %c0_6 = arith.constant 0 : index
    %c0_7 = arith.constant 0 : index
    %9 = vector.load %arg4[%c0_6, %c0_7] : memref<64x32xbf16, #tpu.memory_space<vmem>>, vector<64x32xbf16>
    %cst_8 = arith.constant dense<0.000000e+00> : vector<8x32xf32>
    %10 = tpu.matmul %8, %9, %cst_8 {dimension_numbers = #tpu.dot_dimension_numbers<[1], [0], [0], [1], [0, 0, 1, 1], [], []>} : vector<8x64xbf16>, vector<64x32xbf16>, vector<8x32xf32> -> vector<8x32xf32>
    %c0_9 = arith.constant 0 : index
    %c0_10 = arith.constant 0 : index
    %11 = vector.load %arg5[%c0_9, %c0_10] : memref<1x32xf32, #tpu.memory_space<vmem>>, vector<1x32xf32>
    %12 = vector.broadcast %11 : vector<1x32xf32> to vector<8x32xf32>
    %13 = arith.addf %10, %12 : vector<8x32xf32>
    %cst_11 = arith.constant 0.000000e+00 : f32
    %14 = vector.broadcast %cst_11 : f32 to vector<8x32xf32>
    %15 = arith.maximumf %13, %14 : vector<8x32xf32>
    %16 = arith.truncf %15 : vector<8x32xf32> to vector<8x32xbf16>
    %c0_12 = arith.constant 0 : index
    %c0_13 = arith.constant 0 : index
    %17 = vector.load %arg6[%c0_12, %c0_13] : memref<32x64xbf16, #tpu.memory_space<vmem>>, vector<32x64xbf16>
    %cst_14 = arith.constant dense<0.000000e+00> : vector<8x64xf32>
    %18 = tpu.matmul %16, %17, %cst_14 {dimension_numbers = #tpu.dot_dimension_numbers<[1], [0], [0], [1], [0, 0, 1, 1], [], []>} : vector<8x32xbf16>, vector<32x64xbf16>, vector<8x64xf32> -> vector<8x64xf32>
    %c0_15 = arith.constant 0 : index
    %c0_16 = arith.constant 0 : index
    %19 = vector.load %arg7[%c0_15, %c0_16] : memref<1x64xf32, #tpu.memory_space<vmem>>, vector<1x64xf32>
    %20 = vector.broadcast %19 : vector<1x64xf32> to vector<8x64xf32>
    %21 = arith.addf %18, %20 : vector<8x64xf32>
    %cst_17 = arith.constant 0.000000e+00 : f32
    %22 = vector.broadcast %cst_17 : f32 to vector<8x64xf32>
    %23 = arith.maximumf %21, %22 : vector<8x64xf32>
    %24 = arith.truncf %23 : vector<8x64xf32> to vector<8x64xbf16>
    %c0_18 = arith.constant 0 : index
    %c0_19 = arith.constant 0 : index
    %25 = vector.load %arg8[%c0_18, %c0_19] : memref<64x128xbf16, #tpu.memory_space<vmem>>, vector<64x128xbf16>
    %cst_20 = arith.constant dense<0.000000e+00> : vector<8x128xf32>
    %26 = tpu.matmul %24, %25, %cst_20 {dimension_numbers = #tpu.dot_dimension_numbers<[1], [0], [0], [1], [0, 0, 1, 1], [], []>} : vector<8x64xbf16>, vector<64x128xbf16>, vector<8x128xf32> -> vector<8x128xf32>
    %c0_21 = arith.constant 0 : index
    %c0_22 = arith.constant 0 : index
    %27 = vector.load %arg9[%c0_21, %c0_22] : memref<1x128xf32, #tpu.memory_space<vmem>>, vector<1x128xf32>
    %28 = vector.broadcast %27 : vector<1x128xf32> to vector<8x128xf32>
    %29 = arith.addf %26, %28 : vector<8x128xf32>
    %c0_23 = arith.constant 0 : index
    %c0_24 = arith.constant 0 : index
    %30 = vector.load %arg10[%c0_23, %c0_24] : memref<8x128xf32, #tpu.memory_space<vmem>>, vector<8x128xf32>
    tpu.vector_store %arg10[%c0_23, %c0_24], %29 {strides = array<i32>} : memref<8x128xf32, #tpu.memory_space<vmem>>, vector<8x128xf32>,
    return
  }
  func.func @transform_0(%arg0: i32) -> (i32, i32) {
    %c0_i32 = arith.constant 0 : i32
    %c0_i32_0 = arith.constant 0 : i32
    return %arg0, %c0_i32 : i32, i32
  }
  func.func @transform_1(%arg0: i32) -> (i32, i32) {
    %c0_i32 = arith.constant 0 : i32
    %c0_i32_0 = arith.constant 0 : i32
    %c0_i32_1 = arith.constant 0 : i32
    return %c0_i32, %c0_i32_0 : i32, i32
  }
  func.func @transform_2(%arg0: i32) -> (i32, i32) {
    %c0_i32 = arith.constant 0 : i32
    %c0_i32_0 = arith.constant 0 : i32
    %c0_i32_1 = arith.constant 0 : i32
    return %c0_i32, %c0_i32_0 : i32, i32
  }
  func.func @transform_3(%arg0: i32) -> (i32, i32) {
    %c0_i32 = arith.constant 0 : i32
    %c0_i32_0 = arith.constant 0 : i32
    %c0_i32_1 = arith.constant 0 : i32
    return %c0_i32, %c0_i32_0 : i32, i32
  }
  func.func @transform_4(%arg0: i32) -> (i32, i32) {
    %c0_i32 = arith.constant 0 : i32
    %c0_i32_0 = arith.constant 0 : i32
    %c0_i32_1 = arith.constant 0 : i32
    return %c0_i32, %c0_i32_0 : i32, i32
  }
  func.func @transform_5(%arg0: i32) -> (i32, i32) {
    %c0_i32 = arith.constant 0 : i32
    %c0_i32_0 = arith.constant 0 : i32
    %c0_i32_1 = arith.constant 0 : i32
    return %c0_i32, %c0_i32_0 : i32, i32
  }
  func.func @transform_6(%arg0: i32) -> (i32, i32) {
    %c0_i32 = arith.constant 0 : i32
    %c0_i32_0 = arith.constant 0 : i32
    %c0_i32_1 = arith.constant 0 : i32
    return %c0_i32, %c0_i32_0 : i32, i32
  }
  func.func @transform_7(%arg0: i32) -> (i32, i32) {
    %c0_i32 = arith.constant 0 : i32
    %c0_i32_0 = arith.constant 0 : i32
    %c0_i32_1 = arith.constant 0 : i32
    return %c0_i32, %c0_i32_0 : i32, i32
  }
  func.func @transform_8(%arg0: i32) -> (i32, i32) {
    %c0_i32 = arith.constant 0 : i32
    %c0_i32_0 = arith.constant 0 : i32
    %c0_i32_1 = arith.constant 0 : i32
    return %c0_i32, %c0_i32_0 : i32, i32
  }
  func.func @transform_9(%arg0: i32) -> (i32, i32) {
    %c0_i32 = arith.constant 0 : i32
    %c0_i32_0 = arith.constant 0 : i32
    return %arg0, %c0_i32 : i32, i32
  }
}

</mosaic_0001>

<bundles_post_ra>
// kernel: tpu_custom_call.1
= control target key start
LH: loop header
LB: loop body
LE: loop exit
PB: predicated region body
PF: predicated region fallthrough
CT: control target
= control target key end

     0   :  { %v543_v1 = vmov 0.0   ;;  %vm544_vm0 = vmmov 0   ;;  %s705_s0 = inlined_call_operand.vmem [shape: bf16[8,128], index: 0, kind: input, shape index: {}]   ;;  %s706_s1 = inlined_call_operand.vmem [shape: bf16[128,64], index: 1, kind: input, shape index: {}]   ;;  %s707_s2 = inlined_call_operand.vmem [shape: f32[1,64], index: 2, kind: input, shape index: {}]   ;;  %s708_s3 = inlined_call_operand.vmem [shape: bf16[64,32], index: 3, kind: input, shape index: {}]   ;;  %s709_s4 = inlined_call_operand.vmem [shape: f32[1,32], index: 4, kind: input, shape index: {}]   ;;  %s710_s5 = inlined_call_operand.vmem [shape: bf16[32,64], index: 5, kind: input, shape index: {}]   ;;  %s711_s6 = inlined_call_operand.vmem [shape: f32[1,64], index: 6, kind: input, shape index: {}]   ;;  %s712_s7 = inlined_call_operand.vmem [shape: bf16[64,128], index: 7, kind: input, shape index: {}]   ;;  %s713_s8 = inlined_call_operand.vmem [shape: f32[1,128], index: 8, kind: input, shape index: {}]   ;;  %s714_s9 = inlined_call_operand.hbm [shape: f32[8,128], index: 9, kind: output, shape index: {}]  }
   0x1   :  { %v501_v0 = vld [vmem:[%s706_s1] sm:$0xff]   ;;  %446 = vmatprep.subr.bf16.mxu0 %v543_v1  ;;  %466 = vmatprep.subr.bf16.mxu1 %v543_v1  ;;  %v502_v2 = vld [vmem:[%s706_s1 + $0x8] sm:$0xff]   ;;  %v503_v3 = vld [vmem:[%s706_s1 + $0x10] sm:$0xff]  }
   0x2   :  { %447 = vmatpush3.bf16.msra.mxu0 %v501_v0  ;;  %462 = vmatprep.mubr.msk.bf16.mxu0 %vm544_vm0, %v543_v1  ;;  %v509_v4 = vld [vmem:[%s708_s3] sm:$0xff]   ;;  %v504_v5 = vld [vmem:[%s706_s1 + $0x18] sm:$0xff]   ;;  %v510_v6 = vld [vmem:[%s708_s3 + $0x8] sm:$0xff]  }
   0x3   :  { %448 = vmatprep.subr.bf16.mxu0 %v543_v1  ;;  %474 = vmatprep.mubr.msk.bf16.mxu1 %vm544_vm0, %v543_v1  ;;  %v505_v7 = vld [vmem:[%s706_s1 + $0x20] sm:$0xff]  }
   0x4   :  { %467 = vmatpush3.bf16.msra.mxu1 %v509_v4 }
   0x5   :  { %468 = vmatprep.subr.bf16.mxu1 %v543_v1 }
   0x6   :  { %449 = vmatpush3.bf16.msra.mxu0 %v502_v2 }
   0x7   :  { %450 = vmatprep.subr.bf16.mxu0 %v543_v1 }
   0x8   :  { %469 = vmatpush3.bf16.msra.mxu1 %v510_v6 }
   0x9   :  { %470 = vmatprep.subr.bf16.mxu1 %v543_v1 }
   0xa   :  { %451 = vmatpush3.bf16.msra.mxu0 %v503_v3 }
   0xb   :  { %452 = vmatprep.subr.bf16.mxu0 %v543_v1 }
   0xe   :  { %453 = vmatpush3.bf16.msra.mxu0 %v504_v5 }
   0xf   :  { %454 = vmatprep.subr.bf16.mxu0 %v543_v1 }
  0x10   :  { %14 = vsyncpa [#allocation3], 0  ;;  %v506_v8 = vld [vmem:[%s706_s1 + $0x28] sm:$0xff]   ;;  %v507_v9 = vld [vmem:[%s706_s1 + $0x30] sm:$0xff]   ;;  %vm187_vm1 = vcmask 523264   ;;  %vm256_vm2 = vcmask 261120  }
  0x11   :  { %v508_v10 = vld [vmem:[%s706_s1 + $0x38] sm:$0xff]   ;;  %v34_v11 = vld [vmem:[%s705_s0] sm:$0xf]  ;;  %v511_v12 = vld [vmem:[%s708_s3 + $0x10] sm:$0xff]   ;;  %s545_s28 = smov [#allocation2]  }
  0x12   :  { %455 = vmatpush3.bf16.msra.mxu0 %v505_v7  ;;  %471 = vmatpush3.bf16.msra.mxu1 %v511_v12  ;;  %v512_v13 = vld [vmem:[%s708_s3 + $0x18] sm:$0xff]   ;;  %v399_v14 = vld [vmem:[%s707_s2] ss:$0 sm:$0xff]  ;;  %v514_v23 = vld [vmem:[%s710_s5 + $0x8] sm:$0xff]  }
  0x13   :  { %456 = vmatprep.subr.bf16.mxu0 %v543_v1  ;;  %472 = vmatprep.subr.bf16.mxu1 %v543_v1  ;;  %v513_v21 = vld [vmem:[%s710_s5] sm:$0xff]   ;;  %v516_v33 = vld [vmem:[%s712_s7 + $0x8] sm:$0xff]   ;;  %v517_v34 = vld [vmem:[%s712_s7 + $0x10] sm:$0xff]  }
  0x14   :  { %v408_v24 = vld [vmem:[%s709_s4] ss:$0 sm:$0xff]  ;;  %v518_v35 = vld [vmem:[%s712_s7 + $0x18] sm:$0xff]  }
  0x15   :  { %v515_v31 = vld [vmem:[%s712_s7] sm:$0xff]   ;;  %s391_s7 = sshll.u32 %s545_s28, 4  ;;  %s392_s7 = int_to_ptr.vmem [resolvable:$true] %s391_s7 }
  0x16   :  { %457 = vmatpush3.bf16.msra.mxu0 %v506_v8  ;;  %473 = vmatpush3.bf16.msra.mxu1 %v512_v13  ;;  %v414_v36 = vld [vmem:[%s711_s6] ss:$0 sm:$0xff]  ;;  %s519_s6 = scalar_lea.vmem %s392_s7, 128  ;;  %p524_p1 = scmp.lt.s32.totalorder %s392_s7, %s392_s7 }
  0x17   :  { %458 = vmatprep.subr.bf16.mxu0 %v543_v1  ;;  %478 = vmatprep.subr.bf16.mxu1 %v543_v1  ;;  %v418_v44 = vld [vmem:[%s713_s8] ss:$0 sm:$0xff]  ;;  %p520_p0 = scmp.ne.s32.totalorder %s392_s7, %s519_s6  ;;  %p525_p2 = scmp.lt.s32.totalorder %s519_s6, %s519_s6 }
  0x19   :  { %p526_p3 = por %p525_p2, %p524_p1 }
  0x1a   :  { %459 = vmatpush3.bf16.msra.mxu0 %v507_v9 }
  0x1b   :  { %460 = vmatprep.subr.bf16.mxu0 %v543_v1  ;;  %p527_p4 = pnand %p526_p3, %p520_p0 }
  0x1e   :  { %461 = vmatpush3.bf16.msra.mxu0 %v508_v10 }
  0x21   :  { %463 = vmatmul.mubr.bf16.vlgmr.msra.gmra.mrb[0].mxu0 %v34_v11 }
  0xf4   :  { %v140_v15 = vpop.f32.mrb[0].mxu0 }
  0xf5   :  { %v141_v16 = vadd.f32 %v399_v14, %v140_v15  ;;  %v464_v17 = vpop.f32.mrb[1].mxu0 }
  0xf6   :  { %v143_v18 = vpop.f32.mrb[2].mxu0 }
  0xf7   :  { %v146_v19 = vmax.f32 %v141_v16, 0.0  ;;  %v465_v20 = vpop.f32.mrb[3].mxu0 }
  0xf9   :  { %v147_v22 = vpack.c.bf16 %v146_v19, %v146_v19 }
  0xfb   :  { %475 = vmatmul.mubr.msk.bf16.vlgmr.msra.gmra.mrb[0].mxu1 %vm187_vm1, %v147_v22 }
  0xfc   :  { %479 = vmatpush3.bf16.msra.mxu1 %v513_v21  ;;  %482 = vmatprep.mubr.msk.bf16.mxu1 %vm544_vm0, %v543_v1 }
  0xfd   :  { %480 = vmatprep.subr.bf16.mxu1 %v543_v1 }
 0x100   :  { %481 = vmatpush3.bf16.msra.mxu1 %v514_v23 }
 0x101   :  { %486 = vmatprep.subr.bf16.mxu1 %v543_v1 }
 0x1ce   :  { %v225_v25 = vpop.f32.mrb[0].mxu1 }
 0x1cf   :  { %v226_v26 = vadd.f32 %v408_v24, %v225_v25  ;;  %v476_v27 = vpop.f32.mrb[1].mxu1 }
 0x1d0   :  { %v228_v28 = vpop.f32.mrb[2].mxu1 }
 0x1d1   :  { %v231_v29 = vmax.f32 %v226_v26, 0.0  ;;  %v477_v30 = vpop.f32.mrb[3].mxu1 }
 0x1d3   :  { %v232_v32 = vpack.c.bf16 %v231_v29, %v231_v29 }
 0x1d5   :  { %483 = vmatmul.mubr.msk.bf16.vlgmr.msra.gmra.mrb[4].mxu1 %vm256_vm2, %v232_v32 }
 0x1d6   :  { %487 = vmatpush3.bf16.msra.mxu1 %v515_v31  ;;  %494 = vmatprep.mubr.msk.bf16.mxu1 %vm544_vm0, %v543_v1 }
 0x1d7   :  { %488 = vmatprep.subr.bf16.mxu1 %v543_v1 }
 0x1da   :  { %489 = vmatpush3.bf16.msra.mxu1 %v516_v33 }
 0x1db   :  { %490 = vmatprep.subr.bf16.mxu1 %v543_v1 }
 0x1de   :  { %491 = vmatpush3.bf16.msra.mxu1 %v517_v34 }
 0x1df   :  { %492 = vmatprep.subr.bf16.mxu1 %v543_v1 }
 0x1e2   :  { %493 = vmatpush3.bf16.msra.mxu1 %v518_v35 }
 0x2a8   :  { %v294_v37 = vpop.f32.mrb[4].mxu1 }
 0x2a9   :  { %v295_v38 = vadd.f32 %v414_v36, %v294_v37  ;;  %v484_v39 = vpop.f32.mrb[5].mxu1 }
 0x2aa   :  { %v297_v40 = vpop.f32.mrb[6].mxu1 }
 0x2ab   :  { %v300_v41 = vmax.f32 %v295_v38, 0.0  ;;  %v485_v42 = vpop.f32.mrb[7].mxu1 }
 0x2ad   :  { %v301_v43 = vpack.c.bf16 %v300_v41, %v300_v41 }
 0x2af   :  { %495 = vmatmul.mubr.msk.bf16.vlgmr.msra.gmra.mrb[8].mxu1 %vm187_vm1, %v301_v43 }
 0x382   :  { %v378_v45 = vpop.f32.mrb[8].mxu1 }
 0x383   :  { %v379_v46 = vadd.f32 %v418_v44, %v378_v45  ;;  %v496_v47 = vpop.f32.mrb[9].mxu1 }
 0x384   :  { %v381_v48 = vpop.f32.mrb[10].mxu1 }
 0x385   :  { %384 = vst [vmem:[#allocation2] sm:$0xff] %v379_v46  ;;  %v497_v49 = vpop.f32.mrb[11].mxu1 }
 0x386   :  { %530 = shalt.err (!%p527_p4)
}
 0x387   :  { %s531_s8 = scalar_lea.hbm %s714_s9, 128 }
 0x388   :  { %p532_p5 = scmp.ne.s32.totalorder %s714_s9, %s531_s8  ;;  %p535_p6 = scmp.lt.u32.totalorder %s531_s8, %s714_s9 }
 0x38a   :  { %p537_p7 = pnand %p535_p6, %p532_p5 }
 0x38c   :  { %540 = shalt.err (!%p537_p7)
}
 0x38d   :  { %394 = dma.vmem_to_hbm [thread:$0]  %s392_s7, 128, %s714_s9, [#allocation3]  }
 0x38e   :  { %541 = dma.done.wait [#allocation3], 128  }
 0x38f   :  { %542 = vsyncadd [#allocation3], 4294967168 }
 0x390   :  { %398 = vsyncpa [#allocation3], 1 }

</bundles_post_ra>
